<compile_context>
chip_gen: v7x
topology: tpu7x:2x2x1
jax: 0.10.0
libtpu: 0.0.40
codegen_flags: <defaults>
</compile_context>

<pallas_src>
import functools

import jax
import jax.numpy as jnp
from jax import lax
from jax.experimental import pallas as pl
from jax.experimental.pallas import tpu as pltpu

_MiB = 1024 * 1024


def _chan_layernorm_kernel(eps: float, x_ref, g_ref, o_ref):
    # x_ref block: (BB, C, TN);  g_ref block: (1, C, 1)
    x = x_ref[...].astype(jnp.float32)
    c = x.shape[1]
    inv_c = 1.0 / float(c)

    mean = jnp.sum(x, axis=1, keepdims=True) * inv_c            # (BB, 1, TN)
    xc = x - mean
    var = jnp.sum(xc * xc, axis=1, keepdims=True) * inv_c       # unbiased=False
    inv_std = lax.rsqrt(jnp.maximum(var, eps))                  # clamp(min=eps).rsqrt()

    g = g_ref[...].astype(jnp.float32)                          # (1, C, 1) -> bcast over B, N
    o_ref[...] = (xc * inv_std * g).astype(o_ref.dtype)


def _vmem_capacity_bytes() -> int:
    try:
        info = pltpu.get_tpu_info()
        cap = getattr(info, "vmem_capacity_bytes", None)
        if cap:
            return int(cap)
    except Exception:
        pass
    return 64 * _MiB  # conservative (v7x-sized) fallback


def _pick_tile_n(n: int, rows: int, io_itemsize: int, budget_bytes: int) -> int:
    """Largest lane tile (multiple of 128, or full N) fitting the VMEM budget.

    Per lane column the kernel needs: 2x double-buffered input + 2x output
    blocks in the I/O dtype, plus ~3 f32 blocks of in-kernel temporaries
    (the x.astype(f32) copy, xc, and the pre-cast output).
    """
    per_col = max(1, rows * (4 * io_itemsize + 3 * 4))
    max_tn = max(128, budget_bytes // per_col)
    if max_tn >= n:
        return n  # full-extent block is legal for any alignment
    return max(128, (max_tn // 128) * 128)  # partial last tile handled by cdiv grid


def chan_layer_norm(x: jax.Array, gamma: jax.Array, *, tile_n: int | None = None) -> jax.Array:
    """JAX/Pallas equivalent of ChanLayerNorm(dim).forward(x); x is (B, C, N)."""
    B, C, N = x.shape
    eps = 1e-6 if x.dtype == jnp.float32 else 1e-4
    gamma3d = jnp.reshape(gamma, (1, C, 1))
    itemsize = jnp.dtype(x.dtype).itemsize

    # Generation-aware budgets: ~24 MiB of I/O+temps on 128 MiB parts (v5e/v6e),
    # ~16 MiB on v7x's 64 MiB VMEM; vmem_limit raised above small defaults.
    vmem_cap = _vmem_capacity_bytes()
    budget = min(vmem_cap // 4, 24 * _MiB)
    vmem_limit = int(min(budget + 8 * _MiB, vmem_cap // 2))

    # Fold the batch axis into the block when it still allows healthy tiles.
    tn_folded = _pick_tile_n(N, B * C, itemsize, budget)
    batch_fold = tn_folded >= min(N, 512)

    if batch_fold:
        tn = tile_n if tile_n is not None else tn_folded
        if tile_n is None:
            # v7x has 2 TensorCores: if everything fit in one block but the data
            # is big enough for bandwidth to matter, split N into >=2 tiles.
            io_bytes = 2 * B * C * N * itemsize
            if pl.cdiv(N, tn) == 1 and N >= 256 and io_bytes > 2 * _MiB:
                tn = max(128, ((N + 255) // 256) * 128)
        grid = (pl.cdiv(N, tn),)
        in_specs = [
            pl.BlockSpec((B, C, tn), lambda n: (0, 0, n)),
            pl.BlockSpec((1, C, 1), lambda n: (0, 0, 0)),
        ]
        out_specs = pl.BlockSpec((B, C, tn), lambda n: (0, 0, n))
        dims = ("parallel",)
    else:
        tn = tile_n if tile_n is not None else _pick_tile_n(N, C, itemsize, budget)
        grid = (B, pl.cdiv(N, tn))
        in_specs = [
            pl.BlockSpec((1, C, tn), lambda b, n: (b, 0, n)),
            pl.BlockSpec((1, C, 1), lambda b, n: (0, 0, 0)),
        ]
        out_specs = pl.BlockSpec((1, C, tn), lambda b, n: (b, 0, n))
        dims = ("parallel", "parallel")

    kernel = functools.partial(_chan_layernorm_kernel, eps)
    cost = pl.CostEstimate(
        flops=7 * B * C * N,
        transcendentals=B * N,
        bytes_accessed=2 * B * C * N * itemsize + C * gamma.dtype.itemsize,
    )

    return pl.pallas_call(
        kernel,
        out_shape=jax.ShapeDtypeStruct((B, C, N), x.dtype),
        grid_spec=pltpu.PrefetchScalarGridSpec(
            num_scalar_prefetch=0,
            grid=grid,
            in_specs=in_specs,
            out_specs=out_specs,
        ),
        compiler_params=pltpu.CompilerParams(
            dimension_semantics=dims,
            vmem_limit_bytes=vmem_limit,
        ),
        cost_estimate=cost,
    )(x, gamma3d)


def chan_layer_norm_ref(x: jax.Array, gamma: jax.Array) -> jax.Array:
    """Pure-JAX reference mirroring the PyTorch forward."""
    eps = 1e-6 if x.dtype == jnp.float32 else 1e-4
    xf = x.astype(jnp.float32)
    mean = jnp.mean(xf, axis=1, keepdims=True)
    var = jnp.mean((xf - mean) ** 2, axis=1, keepdims=True)
    out = (xf - mean) * lax.rsqrt(jnp.maximum(var, eps)) * jnp.reshape(
        gamma, (1, -1, 1)).astype(jnp.float32)
    return out.astype(x.dtype)


if __name__ == "__main__":
    key = jax.random.PRNGKey(0)
    k1, k2 = jax.random.split(key)

    # Case 1: small (B, C, N) with gamma = ones (the module's init), single block.
    B, C, N = 2, 8, 256
    x = jax.random.normal(k1, (B, C, N), dtype=jnp.float32)
    gamma = jnp.ones((1, C, 1), dtype=jnp.float32)
    out = jax.block_until_ready(chan_layer_norm(x, gamma))
    ref = chan_layer_norm_ref(x, gamma)
    assert out.shape == (B, C, N) and out.dtype == x.dtype
    assert jnp.allclose(out, ref, atol=1e-5, rtol=1e-5), float(
        jnp.max(jnp.abs(out - ref)))

    # Case 2: non-divisor tile (forced) -> partial last block path, random gamma.
    B2, C2, N2 = 2, 8, 384
    x2 = jax.random.normal(k2, (B2, C2, N2), dtype=jnp.float32)
    gamma2 = jax.random.normal(jax.random.PRNGKey(1), (1, C2, 1), dtype=jnp.float32)
    out2 = jax.block_until_ready(chan_layer_norm(x2, gamma2, tile_n=256))
    ref2 = chan_layer_norm_ref(x2, gamma2)
    assert jnp.allclose(out2, ref2, atol=1e-5, rtol=1e-5), float(
        jnp.max(jnp.abs(out2 - ref2)))

    print("KERNEL_OK")
</pallas_src>

<mosaic_0001>
module attributes {stable_mosaic.version = 11 : i64} {
  func.func @_chan_layernorm_kernel(%arg0: i32, %arg1: memref<2x8x256xf32, #tpu.memory_space<vmem>>, %arg2: memref<1x8x1xf32, #tpu.memory_space<vmem>>, %arg3: memref<2x8x256xf32, #tpu.memory_space<vmem>>) attributes {dimension_semantics = [#tpu.dimension_semantics<parallel>], iteration_bounds = array<i64: 1>, scalar_prefetch = 0 : i64, scratch_operands = 0 : i64, tpu.core_type = #tpu.core_type<tc>, window_params = [{transform_indices = @transform_0, window_bounds = array<i64: 2, 8, 256>}, {pipeline_mode = #tpu.pipeline_mode<synchronous>, transform_indices = @transform_1, window_bounds = array<i64: 1, 8, 1>}, {transform_indices = @transform_2, window_bounds = array<i64: 2, 8, 256>}]} {
    %c0 = arith.constant 0 : index
    %c0_0 = arith.constant 0 : index
    %c0_1 = arith.constant 0 : index
    %0 = vector.load %arg1[%c0, %c0_0, %c0_1] : memref<2x8x256xf32, #tpu.memory_space<vmem>>, vector<2x8x256xf32>
    %cst = arith.constant dense<0.000000e+00> : vector<2x256xf32>
    %1 = vector.multi_reduction <add>, %0, %cst [1] : vector<2x8x256xf32> to vector<2x256xf32>
    %2 = vector.shape_cast %1 : vector<2x256xf32> to vector<2x1x256xf32>
    %cst_2 = arith.constant 1.250000e-01 : f32
    %3 = vector.broadcast %cst_2 : f32 to vector<2x1x256xf32>
    %4 = arith.mulf %2, %3 : vector<2x1x256xf32>
    %5 = vector.broadcast %4 : vector<2x1x256xf32> to vector<2x8x256xf32>
    %6 = arith.subf %0, %5 : vector<2x8x256xf32>
    %7 = arith.mulf %6, %6 : vector<2x8x256xf32>
    %cst_3 = arith.constant dense<0.000000e+00> : vector<2x256xf32>
    %8 = vector.multi_reduction <add>, %7, %cst_3 [1] : vector<2x8x256xf32> to vector<2x256xf32>
    %9 = vector.shape_cast %8 : vector<2x256xf32> to vector<2x1x256xf32>
    %cst_4 = arith.constant 1.250000e-01 : f32
    %10 = vector.broadcast %cst_4 : f32 to vector<2x1x256xf32>
    %11 = arith.mulf %9, %10 : vector<2x1x256xf32>
    %cst_5 = arith.constant 9.99999997E-7 : f32
    %12 = vector.broadcast %cst_5 : f32 to vector<2x1x256xf32>
    %13 = arith.maximumf %11, %12 : vector<2x1x256xf32>
    %14 = math.rsqrt %13 : vector<2x1x256xf32>
    %c0_6 = arith.constant 0 : index
    %c0_7 = arith.constant 0 : index
    %c0_8 = arith.constant 0 : index
    %15 = vector.load %arg2[%c0_6, %c0_7, %c0_8] : memref<1x8x1xf32, #tpu.memory_space<vmem>>, vector<1x8x1xf32>
    %16 = vector.broadcast %14 : vector<2x1x256xf32> to vector<2x8x256xf32>
    %17 = arith.mulf %6, %16 : vector<2x8x256xf32>
    %18 = vector.broadcast %15 : vector<1x8x1xf32> to vector<2x8x256xf32>
    %19 = arith.mulf %17, %18 : vector<2x8x256xf32>
    %c0_9 = arith.constant 0 : index
    %c0_10 = arith.constant 0 : index
    %c0_11 = arith.constant 0 : index
    %20 = vector.load %arg3[%c0_9, %c0_10, %c0_11] : memref<2x8x256xf32, #tpu.memory_space<vmem>>, vector<2x8x256xf32>
    tpu.vector_store %arg3[%c0_9, %c0_10, %c0_11], %19 {strides = array<i32>} : memref<2x8x256xf32, #tpu.memory_space<vmem>>, vector<2x8x256xf32>,
    return
  }
  func.func @transform_0(%arg0: i32) -> (i32, i32, i32) {
    %c0_i32 = arith.constant 0 : i32
    %c0_i32_0 = arith.constant 0 : i32
    %c0_i32_1 = arith.constant 0 : i32
    return %c0_i32, %c0_i32_0, %arg0 : i32, i32, i32
  }
  func.func @transform_1(%arg0: i32) -> (i32, i32, i32) {
    %c0_i32 = arith.constant 0 : i32
    %c0_i32_0 = arith.constant 0 : i32
    %c0_i32_1 = arith.constant 0 : i32
    %c0_i32_2 = arith.constant 0 : i32
    return %c0_i32, %c0_i32_0, %c0_i32_1 : i32, i32, i32
  }
  func.func @transform_2(%arg0: i32) -> (i32, i32, i32) {
    %c0_i32 = arith.constant 0 : i32
    %c0_i32_0 = arith.constant 0 : i32
    %c0_i32_1 = arith.constant 0 : i32
    return %c0_i32, %c0_i32_0, %arg0 : i32, i32, i32
  }
}

</mosaic_0001>

<bundles_post_ra>
// kernel: tpu_custom_call.1
= control target key start
LH: loop header
LB: loop body
LE: loop exit
PB: predicated region body
PF: predicated region fallthrough
CT: control target
= control target key end

     0   :  { %7 = vsyncpa [#allocation3], 0  ;;  %s252_s0 = inlined_call_operand.hbm [shape: f32[2,8,256], index: 0, kind: input, shape index: {}]   ;;  %s253_s1 = inlined_call_operand.vmem [shape: f32[1,8,1], index: 1, kind: input, shape index: {}]   ;;  %s254_s2 = inlined_call_operand.hbm [shape: f32[2,8,256], index: 2, kind: output, shape index: {}]  }
   0x1   :  { %8 = vsyncpa [#allocation4], 0  ;;  %s199_s9 = smov [#allocation2]   ;;  %s151_s13 = scalar_lea.hbm %s252_s0, 512 }
   0x2   :  { %s14_s10 = sshll.u32 %s199_s9, 4  ;;  %p152_p0 = scmp.ne.s32.totalorder %s252_s0, %s151_s13  ;;  %s15_s10 = int_to_ptr.vmem [resolvable:$true] %s14_s10 }
   0x3   :  { %p155_p1 = scmp.lt.u32.totalorder %s151_s13, %s252_s0 }
   0x5   :  { %p157_p2 = pnand %p155_p1, %p152_p0 }
   0x7   :  { %160 = shalt.err (!%p157_p2)
}
   0x8   :  { %s161_s18 = scalar_lea.vmem %s15_s10, 512  ;;  %p166_p4 = scmp.lt.s32.totalorder %s15_s10, %s15_s10 }
   0x9   :  { %p162_p3 = scmp.ne.s32.totalorder %s15_s10, %s161_s18  ;;  %p167_p5 = scmp.lt.s32.totalorder %s161_s18, %s161_s18 }
   0xb   :  { %p168_p6 = por %p167_p5, %p166_p4 }
   0xd   :  { %p169_p7 = pnand %p168_p6, %p162_p3 }
   0xf   :  { %172 = shalt.err (!%p169_p7)
}
  0x10   :  { %s200_s19 = smov 256   ;;  %s201_s20 = smov 16  }
  0x11   :  { %20 = dma.hbm_to_vmem [thread:$0]  %s252_s0, 512, %s15_s10, [#allocation3], %s200_s19, %s200_s19, %s201_s20  }
  0x12   :  { %195 = dma.done.wait [#allocation3], 512  }
  0x13   :  { %196 = vsyncadd [#allocation3], 4294966784  ;;  %v202_v0 = vmov 0   ;;  %v102_v1 = vld [vmem:[%s253_s1] sm:$0xff]  ;;  %v27_v3 = vld [vmem:[#allocation2 + $0x8] sm:$0xff]  ;;  %s203_s0 = smov [#allocation5]  }
  0x14   :  { %142 = vset.pattern.permute.xlu0 %v202_v0  ;;  %v26_v2 = vld [vmem:[#allocation2] sm:$0xff]  ;;  %v28_v4 = vld [vmem:[#allocation2 + $0x10] sm:$0xff]  ;;  %v29_v5 = vld [vmem:[#allocation2 + $0x18] sm:$0xff]  ;;  %v36_v7 = vrot.slane %v27_v3, 4  ;;  %s125_s1 = sshll.u32 %s203_s0, 4  ;;  %s126_s1 = int_to_ptr.vmem [resolvable:$true] %s125_s1 }
  0x15   :  { %109 = vperm.xlu0 %142, %v102_v1   ;;  %v30_v6 = vrot.slane %v26_v2, 4  ;;  %v42_v8 = vrot.slane %v28_v4, 4  ;;  %v48_v9 = vrot.slane %v29_v5, 4  ;;  %s173_s25 = scalar_lea.vmem %s126_s1, 512  ;;  %p178_p9 = scmp.lt.s32.totalorder %s126_s1, %s126_s1 }
  0x16   :  { %v37_v11 = vadd.f32 %v36_v7, %v27_v3  ;;  %p174_p8 = scmp.ne.s32.totalorder %s126_s1, %s173_s25  ;;  %p179_p10 = scmp.lt.s32.totalorder %s173_s25, %s173_s25 }
  0x17   :  { %v31_v10 = vadd.f32 %v30_v6, %v26_v2  ;;  %v43_v12 = vadd.f32 %v42_v8, %v28_v4  ;;  %v49_v13 = vadd.f32 %v48_v9, %v29_v5 }
  0x18   :  { %v38_v15 = vrot.slane %v37_v11, 2  ;;  %p180_p11 = por %p179_p10, %p178_p9 }
  0x19   :  { %v32_v14 = vrot.slane %v31_v10, 2  ;;  %v44_v16 = vrot.slane %v43_v12, 2  ;;  %v50_v17 = vrot.slane %v49_v13, 2 }
  0x1a   :  { %v39_v19 = vadd.f32 %v38_v15, %v37_v11  ;;  %p181_p12 = pnand %p180_p11, %p174_p8 }
  0x1b   :  { %v33_v18 = vadd.f32 %v32_v14, %v31_v10  ;;  %v45_v20 = vadd.f32 %v44_v16, %v43_v12  ;;  %v51_v21 = vadd.f32 %v50_v17, %v49_v13 }
  0x1c   :  { %v40_v23 = vrot.slane %v39_v19, 1 }
  0x1d   :  { %v34_v22 = vrot.slane %v33_v18, 1  ;;  %v46_v24 = vrot.slane %v45_v20, 1  ;;  %v52_v25 = vrot.slane %v51_v21, 1 }
  0x1e   :  { %v41_v27 = vadd.f32 %v40_v23, %v39_v19 }
  0x1f   :  { %v35_v26 = vadd.f32 %v34_v22, %v33_v18  ;;  %v47_v28 = vadd.f32 %v46_v24, %v45_v20  ;;  %v53_v29 = vadd.f32 %v52_v25, %v51_v21 }
  0x20   :  { %v55_v31 = vmul.f32 0.125, %v41_v27 }
  0x21   :  { %v54_v30 = vmul.f32 0.125, %v35_v26  ;;  %v56_v32 = vmul.f32 0.125, %v47_v28  ;;  %v57_v33 = vmul.f32 0.125, %v53_v29 }
  0x22   :  { %v59_v35 = vsub.f32 %v27_v3, %v55_v31 }
  0x23   :  { %v58_v34 = vsub.f32 %v26_v2, %v54_v30  ;;  %v60_v36 = vsub.f32 %v28_v4, %v56_v32  ;;  %v61_v37 = vsub.f32 %v29_v5, %v57_v33 }
  0x24   :  { %v63_v39 = vmul.f32 %v59_v35, %v59_v35 }
  0x25   :  { %v62_v38 = vmul.f32 %v58_v34, %v58_v34  ;;  %v64_v40 = vmul.f32 %v60_v36, %v60_v36  ;;  %v65_v41 = vmul.f32 %v61_v37, %v61_v37 }
  0x26   :  { %v72_v43 = vrot.slane %v63_v39, 4 }
  0x27   :  { %v66_v42 = vrot.slane %v62_v38, 4  ;;  %v78_v44 = vrot.slane %v64_v40, 4  ;;  %v84_v45 = vrot.slane %v65_v41, 4 }
  0x28   :  { %v73_v47 = vadd.f32 %v72_v43, %v63_v39 }
  0x29   :  { %v67_v46 = vadd.f32 %v66_v42, %v62_v38  ;;  %v79_v48 = vadd.f32 %v78_v44, %v64_v40  ;;  %v85_v49 = vadd.f32 %v84_v45, %v65_v41 }
  0x2a   :  { %v74_v51 = vrot.slane %v73_v47, 2 }
  0x2b   :  { %v68_v50 = vrot.slane %v67_v46, 2  ;;  %v80_v52 = vrot.slane %v79_v48, 2  ;;  %v86_v53 = vrot.slane %v85_v49, 2 }
  0x2c   :  { %v75_v55 = vadd.f32 %v74_v51, %v73_v47 }
  0x2d   :  { %v69_v54 = vadd.f32 %v68_v50, %v67_v46  ;;  %v81_v56 = vadd.f32 %v80_v52, %v79_v48  ;;  %v87_v57 = vadd.f32 %v86_v53, %v85_v49 }
  0x2e   :  { %v76_v59 = vrot.slane %v75_v55, 1 }
  0x2f   :  { %v70_v58 = vrot.slane %v69_v54, 1  ;;  %v82_v60 = vrot.slane %v81_v56, 1  ;;  %v88_v61 = vrot.slane %v87_v57, 1 }
  0x30   :  { %v77_v63 = vadd.f32 %v76_v59, %v75_v55 }
  0x31   :  { %v71_v62 = vadd.f32 %v70_v58, %v69_v54  ;;  %v83_v0 = vadd.f32 %v82_v60, %v81_v56  ;;  %v89_v1 = vadd.f32 %v88_v61, %v87_v57 }
  0x32   :  { %v91_v3 = vmul.f32 0.125, %v77_v63 }
  0x33   :  { %v90_v2 = vmul.f32 0.125, %v71_v62  ;;  %v92_v4 = vmul.f32 0.125, %v83_v0  ;;  %v93_v5 = vmul.f32 0.125, %v89_v1 }
  0x34   :  { %v95_v7 = vmax.f32 %v91_v3, 1e-06 }
  0x35   :  { %v94_v6 = vmax.f32 %v90_v2, 1e-06  ;;  %v96_v8 = vmax.f32 %v92_v4, 1e-06  ;;  %v97_v9 = vmax.f32 %v93_v5, 1e-06 }
  0x37   :  { %143 = vrsqrt.f32 %v94_v6 }
  0x38   :  { %145 = vrsqrt.f32 %v95_v7 }
  0x39   :  { %147 = vrsqrt.f32 %v96_v8 }
  0x3a   :  { %149 = vrsqrt.f32 %v97_v9 }
  0x41   :  { %v144_v10 = vpop.eup %143 }
  0x42   :  { %v146_v11 = vpop.eup %145  ;;  %v103_v14 = vmul.f32 %v144_v10, %v58_v34 }
  0x43   :  { %v148_v12 = vpop.eup %147  ;;  %v104_v15 = vmul.f32 %v146_v11, %v59_v35 }
  0x44   :  { %v150_v13 = vpop.eup %149  ;;  %v105_v16 = vmul.f32 %v148_v12, %v60_v36 }
  0x45   :  { %v106_v17 = vmul.f32 %v150_v13, %v61_v37 }
  0x94   :  { %v110_v18 = vpop.permute.xlu0 %109 }
  0x95   :  { %v112_v19 = vmul.f32 %v110_v18, %v103_v14  ;;  %v113_v20 = vmul.f32 %v110_v18, %v104_v15  ;;  %v114_v21 = vmul.f32 %v110_v18, %v105_v16  ;;  %v115_v22 = vmul.f32 %v110_v18, %v106_v17 }
  0x97   :  { %116 = vst [vmem:[#allocation5] sm:$0xff] %v112_v19  ;;  %117 = vst [vmem:[#allocation5 + $0x8] sm:$0xff] %v113_v20 }
  0x98   :  { %118 = vst [vmem:[#allocation5 + $0x10] sm:$0xff] %v114_v21  ;;  %119 = vst [vmem:[#allocation5 + $0x18] sm:$0xff] %v115_v22 }
  0x99   :  { %184 = shalt.err (!%p181_p12)
}
  0x9a   :  { %s185_s28 = scalar_lea.hbm %s254_s2, 512 }
  0x9b   :  { %p186_p13 = scmp.ne.s32.totalorder %s254_s2, %s185_s28  ;;  %p189_p0 = scmp.lt.u32.totalorder %s185_s28, %s254_s2 }
  0x9d   :  { %p191_p1 = pnand %p189_p0, %p186_p13 }
  0x9f   :  { %194 = shalt.err (!%p191_p1)
}
  0xa0   :  { %131 = dma.vmem_to_hbm [thread:$0]  %s126_s1, 512, %s254_s2, [#allocation4], %s200_s19, %s200_s19, %s201_s20  }
  0xa1   :  { %197 = dma.done.wait [#allocation4], 512  }
  0xa2   :  { %198 = vsyncadd [#allocation4], 4294966784 }
  0xa3   :  { %135 = vsyncpa [#allocation3], 1 }
  0xa4   :  { %136 = vsyncpa [#allocation4], 1 }

</bundles_post_ra>
